<compile_context>
chip_gen: v7x
topology: tpu7x:2x2x1
jax: 0.10.0
libtpu: 0.0.40
codegen_flags: <defaults>
</compile_context>

<pallas_src>
import functools

import jax
import jax.numpy as jnp
from jax.experimental import pallas as pl
from jax.experimental.pallas import tpu as pltpu


def _round_up(v: int, m: int) -> int:
    return (v + m - 1) // m * m


def _single_linear_kernel(x_ref, w_ref, b_ref, o_ref, *, cast_bf16):
    # x_ref: [TM, kd], w_ref: [kd, nd], b_ref: [1, nd], o_ref: [TM, nd]
    x = x_ref[...]
    w = w_ref[...]
    if cast_bf16:
        # Opt-in: bf16 operands (MXU-native), f32 accumulation & epilogue.
        x = x.astype(jnp.bfloat16)
        w = w.astype(jnp.bfloat16)
    z = jnp.dot(x, w, preferred_element_type=jnp.float32)
    z = z + b_ref[...].astype(jnp.float32)          # bias broadcast, f32
    o_ref[...] = jax.nn.sigmoid(z).astype(o_ref.dtype)


def single_linear(x, w, b, *, max_tile_m: int = 8192,
                  tile_vmem_budget_bytes: int = 40 * 1024 * 1024,
                  use_bf16_matmul: bool = False):
    """y = sigmoid(x @ w + b); x: [..., d_model], w: [d_model, d_out], b: [d_out]."""
    *lead, d_model = x.shape
    d_out = w.shape[1]
    m = 1
    for s in lead:
        m *= s

    # ---- lane packing: `pack` logical rows per 128-lane row (exact) -----------
    pack = 128 // d_model if (d_model <= 128 and 128 % d_model == 0) else 1
    while pack > 1 and m % pack != 0:
        pack //= 2
    kd, nd, mp = pack * d_model, pack * d_out, m // pack

    x2 = x.reshape(mp, kd)                       # contiguous -> free reshape
    if pack > 1:
        w2 = jnp.kron(jnp.eye(pack, dtype=w.dtype), w)   # block-diag [kd, nd]
        b2 = jnp.tile(b, pack).reshape(1, nd)
    else:
        w2 = w
        b2 = b.reshape(1, nd)

    x_itemsize = jnp.dtype(x.dtype).itemsize
    w_itemsize = jnp.dtype(w.dtype).itemsize

    # ---- tile-size selection (lane-padding-aware VMEM accounting) -------------
    x_row_bytes = _round_up(kd, 128) * x_itemsize
    o_row_bytes = _round_up(nd, 128) * x_itemsize
    per_row_bytes = 2 * (x_row_bytes + o_row_bytes)          # double-buffered
    resident_bytes = 2 * (_round_up(kd, 8) + 8) * _round_up(nd, 128) * w_itemsize
    fit_rows = max((tile_vmem_budget_bytes - resident_bytes) // per_row_bytes, 8)
    fit_rows = (fit_rows // 8) * 8               # sublane-aligned, floor

    if mp <= 8:
        tile_m = mp                              # one full-array block (always legal)
    else:
        # Aim for >= 4 grid steps so v7x's 2 TensorCores are both used and
        # DMA/compute overlap; ragged last block is fine (masked writes).
        quarter = _round_up(pl.cdiv(mp, 4), 8)
        tile_m = int(max(8, min(fit_rows, max_tile_m, quarter)))

    grid = (pl.cdiv(mp, tile_m),)

    cost = pl.CostEstimate(
        flops=2 * mp * kd * nd,
        transcendentals=mp * nd,
        bytes_accessed=(mp * kd * x_itemsize
                        + (kd * nd + nd) * w_itemsize
                        + mp * nd * x_itemsize),
    )

    out = pl.pallas_call(
        functools.partial(_single_linear_kernel, cast_bf16=use_bf16_matmul),
        out_shape=jax.ShapeDtypeStruct((mp, nd), x.dtype),
        grid=grid,
        in_specs=[
            pl.BlockSpec((tile_m, kd), lambda i: (i, 0)),
            pl.BlockSpec((kd, nd), lambda i: (0, 0)),     # resident weight
            pl.BlockSpec((1, nd), lambda i: (0, 0)),      # resident bias
        ],
        out_specs=pl.BlockSpec((tile_m, nd), lambda i: (i, 0)),
        compiler_params=pltpu.CompilerParams(
            dimension_semantics=("parallel",),   # rows independent -> 2 TCs on v7x
            vmem_limit_bytes=48 * 1024 * 1024,   # < v7x's 64 MiB physical VMEM
        ),
        cost_estimate=cost,
    )(x2, w2, b2)

    return out.reshape(m, d_out).reshape(*lead, d_out)


if __name__ == "__main__":
    # Shapes implied by the module: Linear(d_model, d_out) + Sigmoid over the
    # last axis of an arbitrary-rank input.
    batch, seq, d_model, d_out = 2, 8, 32, 16

    key = jax.random.PRNGKey(0)
    kx, kw, kb = jax.random.split(key, 3)

    x = jax.random.normal(kx, (batch, seq, d_model), dtype=jnp.float32)

    # Deterministic parameter init mimicking PyTorch's default
    # (uniform in [-1/sqrt(d_model), 1/sqrt(d_model)]).  PyTorch stores the
    # weight as [d_out, d_model]; we keep it transposed [d_model, d_out].
    bound = 1.0 / (d_model ** 0.5)
    w = jax.random.uniform(kw, (d_model, d_out), minval=-bound, maxval=bound,
                           dtype=jnp.float32)
    b = jax.random.uniform(kb, (d_out,), minval=-bound, maxval=bound,
                           dtype=jnp.float32)

    y = single_linear(x, w, b)
    jax.block_until_ready(y)

    y_ref = jax.nn.sigmoid(jnp.einsum("...d,do->...o", x, w) + b)
    assert y.shape == (batch, seq, d_out)
    assert jnp.allclose(y, y_ref, atol=1e-5, rtol=1e-5)

    # Second small check: M not a multiple of the tile -> multi-step grid with
    # a ragged last block (the common large-M path).
    x_big = jax.random.normal(kx, (5, 52, d_model), dtype=jnp.float32)
    y_big = single_linear(x_big, w, b)
    jax.block_until_ready(y_big)
    y_big_ref = jax.nn.sigmoid(jnp.einsum("...d,do->...o", x_big, w) + b)
    assert y_big.shape == (5, 52, d_out)
    assert jnp.allclose(y_big, y_big_ref, atol=1e-5, rtol=1e-5)

    print("KERNEL_OK")
</pallas_src>

<mosaic_0001>
module attributes {stable_mosaic.version = 11 : i64} {
  func.func @_single_linear_kernel(%arg0: i32, %arg1: memref<4x128xf32, #tpu.memory_space<vmem>>, %arg2: memref<128x64xf32, #tpu.memory_space<vmem>>, %arg3: memref<1x64xf32, #tpu.memory_space<vmem>>, %arg4: memref<4x64xf32, #tpu.memory_space<vmem>>) attributes {dimension_semantics = [#tpu.dimension_semantics<parallel>], iteration_bounds = array<i64: 1>, scalar_prefetch = 0 : i64, scratch_operands = 0 : i64, tpu.core_type = #tpu.core_type<tc>, window_params = [{transform_indices = @transform_0, window_bounds = array<i64: 4, 128>}, {pipeline_mode = #tpu.pipeline_mode<synchronous>, transform_indices = @transform_1, window_bounds = array<i64: 128, 64>}, {pipeline_mode = #tpu.pipeline_mode<synchronous>, transform_indices = @transform_2, window_bounds = array<i64: 1, 64>}, {transform_indices = @transform_3, window_bounds = array<i64: 4, 64>}]} {
    %c0 = arith.constant 0 : index
    %c0_0 = arith.constant 0 : index
    %0 = vector.load %arg1[%c0, %c0_0] : memref<4x128xf32, #tpu.memory_space<vmem>>, vector<4x128xf32>
    %c0_1 = arith.constant 0 : index
    %c0_2 = arith.constant 0 : index
    %1 = vector.load %arg2[%c0_1, %c0_2] : memref<128x64xf32, #tpu.memory_space<vmem>>, vector<128x64xf32>
    %cst = arith.constant dense<0.000000e+00> : vector<4x64xf32>
    %2 = tpu.matmul %0, %1, %cst {dimension_numbers = #tpu.dot_dimension_numbers<[1], [0], [0], [1], [0, 0, 1, 1], [], []>} : vector<4x128xf32>, vector<128x64xf32>, vector<4x64xf32> -> vector<4x64xf32>
    %c0_3 = arith.constant 0 : index
    %c0_4 = arith.constant 0 : index
    %3 = vector.load %arg3[%c0_3, %c0_4] : memref<1x64xf32, #tpu.memory_space<vmem>>, vector<1x64xf32>
    %4 = vector.broadcast %3 : vector<1x64xf32> to vector<4x64xf32>
    %5 = arith.addf %2, %4 : vector<4x64xf32>
    %6 = arith.negf %5 : vector<4x64xf32>
    %7 = math.exp %6 : vector<4x64xf32>
    %cst_5 = arith.constant 1.000000e+00 : f32
    %8 = vector.broadcast %cst_5 : f32 to vector<4x64xf32>
    %9 = arith.addf %8, %7 : vector<4x64xf32>
    %10 = arith.divf %8, %9 : vector<4x64xf32>
    %c0_6 = arith.constant 0 : index
    %c0_7 = arith.constant 0 : index
    %11 = vector.load %arg4[%c0_6, %c0_7] : memref<4x64xf32, #tpu.memory_space<vmem>>, vector<4x64xf32>
    tpu.vector_store %arg4[%c0_6, %c0_7], %10 {strides = array<i32>} : memref<4x64xf32, #tpu.memory_space<vmem>>, vector<4x64xf32>,
    return
  }
  func.func @transform_0(%arg0: i32) -> (i32, i32) {
    %c0_i32 = arith.constant 0 : i32
    %c0_i32_0 = arith.constant 0 : i32
    return %arg0, %c0_i32 : i32, i32
  }
  func.func @transform_1(%arg0: i32) -> (i32, i32) {
    %c0_i32 = arith.constant 0 : i32
    %c0_i32_0 = arith.constant 0 : i32
    %c0_i32_1 = arith.constant 0 : i32
    return %c0_i32, %c0_i32_0 : i32, i32
  }
  func.func @transform_2(%arg0: i32) -> (i32, i32) {
    %c0_i32 = arith.constant 0 : i32
    %c0_i32_0 = arith.constant 0 : i32
    %c0_i32_1 = arith.constant 0 : i32
    return %c0_i32, %c0_i32_0 : i32, i32
  }
  func.func @transform_3(%arg0: i32) -> (i32, i32) {
    %c0_i32 = arith.constant 0 : i32
    %c0_i32_0 = arith.constant 0 : i32
    return %arg0, %c0_i32 : i32, i32
  }
}

</mosaic_0001>

<bundles_post_ra>
// kernel: tpu_custom_call.1
= control target key start
LH: loop header
LB: loop body
LE: loop exit
PB: predicated region body
PF: predicated region fallthrough
CT: control target
= control target key end

     0   :  { %v241_v3 = vmov 0.0|0.0   ;;  %vm242_vm0 = vmmov 0   ;;  %v243_v6 = vmov 0.0   ;;  %s331_s0 = inlined_call_operand.vmem [shape: f32[4,128], index: 0, kind: input, shape index: {}]   ;;  %s332_s1 = inlined_call_operand.vmem [shape: f32[128,64], index: 1, kind: input, shape index: {}]   ;;  %s333_s2 = inlined_call_operand.vmem [shape: f32[1,64], index: 2, kind: input, shape index: {}]   ;;  %s334_s3 = inlined_call_operand.hbm [shape: f32[4,64], index: 3, kind: output, shape index: {}]  }
   0x1   :  { %v16_v0 = vld [vmem:[%s332_s1] sm:$0xff]  ;;  %v17_v1 = vld [vmem:[%s332_s1 + $0x8] sm:$0xff]  ;;  %v18_v2 = vld [vmem:[%s332_s1 + $0x10] sm:$0xff]  ;;  %185 = vmatprep.subr.bf16.mxu0 %v241_v3  ;;  %182 = vmatprep.mubr.msk.f32.mxu0 %vm242_vm0, %v243_v6 }
   0x2   :  { %v186_v4 = vpack.c.bf16 %v17_v1, %v16_v0  ;;  %v19_v5 = vld [vmem:[%s332_s1 + $0x18] sm:$0xff]  ;;  %v20_v8 = vld [vmem:[%s332_s1 + $0x20] sm:$0xff]  ;;  %v21_v9 = vld [vmem:[%s332_s1 + $0x28] sm:$0xff] }
   0x3   :  { %v189_v7 = vpack.c.bf16 %v19_v5, %v18_v2 }
   0x4   :  { %187 = vmatpush3.bf16.msra.mxu0 %v186_v4 }
   0x5   :  { %188 = vmatprep.subr.bf16.mxu0 %v241_v3 }
   0x6   :  { %8 = vsyncpa [#allocation3], 0  ;;  %v192_v10 = vpack.c.bf16 %v21_v9, %v20_v8  ;;  %v22_v11 = vld [vmem:[%s332_s1 + $0x30] sm:$0xff]  ;;  %v23_v12 = vld [vmem:[%s332_s1 + $0x38] sm:$0xff]  ;;  %vm115_vm1 = vcmask 519168  }
   0x7   :  { %v195_v13 = vpack.c.bf16 %v23_v12, %v22_v11  ;;  %v24_v14 = vld [vmem:[%s332_s1 + $0x40] sm:$0xff]  ;;  %v25_v15 = vld [vmem:[%s332_s1 + $0x48] sm:$0xff]  ;;  %v26_v17 = vld [vmem:[%s332_s1 + $0x50] sm:$0xff] }
   0x8   :  { %190 = vmatpush3.bf16.msra.mxu0 %v189_v7  ;;  %v198_v16 = vpack.c.bf16 %v25_v15, %v24_v14  ;;  %v27_v18 = vld [vmem:[%s332_s1 + $0x58] sm:$0xff]  ;;  %v28_v20 = vld [vmem:[%s332_s1 + $0x60] sm:$0xff]  ;;  %v29_v21 = vld [vmem:[%s332_s1 + $0x68] sm:$0xff] }
   0x9   :  { %191 = vmatprep.subr.bf16.mxu0 %v241_v3  ;;  %v201_v19 = vpack.c.bf16 %v27_v18, %v26_v17  ;;  %v204_v22 = vpack.c.bf16 %v29_v21, %v28_v20  ;;  %v30_v23 = vld [vmem:[%s332_s1 + $0x70] sm:$0xff]  ;;  %v31_v24 = vld [vmem:[%s332_s1 + $0x78] sm:$0xff]  ;;  %v15_v26 = vld [vmem:[%s331_s0] sm:$0xf]  ;;  %s244_s1 = smov [#allocation2]  }
   0xa   :  { %v207_v25 = vpack.c.bf16 %v31_v24, %v30_v23  ;;  %v131_v27 = vld [vmem:[%s333_s2] ss:$0 sm:$0xff]  ;;  %s123_s21 = sshll.u32 %s244_s1, 4  ;;  %s124_s21 = int_to_ptr.vmem [resolvable:$true] %s123_s21 }
   0xb   :  { %s217_s0 = scalar_lea.vmem %s124_s21, 64  ;;  %p222_p1 = scmp.lt.s32.totalorder %s124_s21, %s124_s21 }
   0xc   :  { %193 = vmatpush3.bf16.msra.mxu0 %v192_v10  ;;  %p218_p0 = scmp.ne.s32.totalorder %s124_s21, %s217_s0  ;;  %p223_p2 = scmp.lt.s32.totalorder %s217_s0, %s217_s0 }
   0xd   :  { %194 = vmatprep.subr.bf16.mxu0 %v241_v3 }
   0xe   :  { %p224_p3 = por %p223_p2, %p222_p1 }
  0x10   :  { %196 = vmatpush3.bf16.msra.mxu0 %v195_v13  ;;  %p225_p4 = pnand %p224_p3, %p218_p0 }
  0x11   :  { %197 = vmatprep.subr.bf16.mxu0 %v241_v3 }
  0x14   :  { %199 = vmatpush3.bf16.msra.mxu0 %v198_v16 }
  0x15   :  { %200 = vmatprep.subr.bf16.mxu0 %v241_v3 }
  0x18   :  { %202 = vmatpush3.bf16.msra.mxu0 %v201_v19 }
  0x19   :  { %203 = vmatprep.subr.bf16.mxu0 %v241_v3 }
  0x1c   :  { %205 = vmatpush3.bf16.msra.mxu0 %v204_v22 }
  0x1d   :  { %206 = vmatprep.subr.bf16.mxu0 %v241_v3 }
  0x20   :  { %208 = vmatpush3.bf16.msra.mxu0 %v207_v25 }
  0x23   :  { %183 = vmatmul.mubr.f32.vlgmr.msra.gmra.mrb[0].mxu0 %v15_v26 }
  0xf6   :  { %v105_v28 = vpop.f32.mrb[0].mxu0 }
  0xf7   :  { %v106_v29 = vadd.f32 %v131_v27, %v105_v28  ;;  %v184_v30 = vpop.f32.mrb[1].mxu0 }
  0xf9   :  { %v132_v31 = vmul.f32 -1.442695, %v106_v29 }
  0xfb   :  { %213 = vpow2.f32 %v132_v31 }
 0x105   :  { %v214_v32 = vpop.eup %213 }
 0x106   :  { %v112_v33 = vadd.f32 1.0, %v214_v32 }
 0x108   :  { %215 = vrcp.f32 %v112_v33 }
 0x112   :  { %v216_v34 = vpop.eup %215 }
 0x113   :  { %116 = vst.msk [vmem:[#allocation2] sm:$0xf] %vm115_vm1, %v216_v34 }
 0x114   :  { %228 = shalt.err (!%p225_p4)
}
 0x115   :  { %s229_s23 = scalar_lea.hbm %s334_s3, 64 }
 0x116   :  { %p230_p5 = scmp.ne.s32.totalorder %s334_s3, %s229_s23  ;;  %p233_p6 = scmp.lt.u32.totalorder %s229_s23, %s334_s3 }
 0x118   :  { %p235_p7 = pnand %p233_p6, %p230_p5 }
 0x11a   :  { %238 = shalt.err (!%p235_p7)
}
 0x11b   :  { %126 = dma.vmem_to_hbm [thread:$0]  %s124_s21, 64, %s334_s3, [#allocation3]  }
 0x11c   :  { %239 = dma.done.wait [#allocation3], 64  }
 0x11d   :  { %240 = vsyncadd [#allocation3], 4294967232 }
 0x11e   :  { %130 = vsyncpa [#allocation3], 1 }

</bundles_post_ra>
